<compile_context>
chip_gen: v7x
topology: tpu7x:2x2x1
jax: 0.10.0
libtpu: 0.0.40
codegen_flags: <defaults>
</compile_context>

<pallas_src>
import functools

import jax
import jax.numpy as jnp
from jax import lax
from jax.experimental import pallas as pl
from jax.experimental.pallas import tpu as pltpu


# ------------------------------ fused kernel ------------------------------- #

def _fused_ir_kernel(xp_ref, mask_ref, w1t_ref, b1_ref, wd_ref, b2_ref,
                     w3t_ref, b3_ref, o_ref, *, wpad, use_res):
    """Whole InvertedResidual for one image, lane-dense (C, pixels) layout.

    xp_ref  : (Cin, Lp)   zero-padded input; Lp = (H+3)*(W+2) flat spatial on lanes
    mask_ref: (1,  Lp)    1.0 on the valid interior, 0.0 on the halo ring
    w1t_ref : (Hid, Cin)  b1_ref: (Hid, 1)   expand 1x1 conv (BN folded)
    wd_ref  : (Hid, 9)    b2_ref: (Hid, 1)   3x3 depthwise, tap k = kh*3+kw
    w3t_ref : (Oup, Hid)  b3_ref: (Oup, 1)   project 1x1 conv (BN folded)
    o_ref   : (Oup, Lo)   Lo = H*(W+2): full-resolution, row-padded output slab
    """
    lo = o_ref.shape[-1]                       # H * Wpad
    x = xp_ref[...]                            # (Cin, Lp) f32

    # ---- 1) 1x1 expand + BN + ReLU  (MXU: (Hid,Cin) @ (Cin,Lp)) ----
    h1 = jnp.dot(w1t_ref[...], x, preferred_element_type=jnp.float32)
    # ReLU, then zero the halo ring (padded pixels give relu(b1) != 0 but the
    # depthwise conv needs true zeros there).  Single precomputed-mask multiply.
    h1 = jnp.maximum(h1 + b1_ref[...], 0.0) * mask_ref[...]

    # ---- 2) 3x3 depthwise + BN + ReLU (VPU: 9 unit-stride lane-offset taps) --
    # Output flat index q = y*Wpad + x reads h1 at q + kh*Wpad + kw; the two
    # garbage columns per row (x >= W) are dropped by the wrapper.
    wd = wd_ref[...]                           # (Hid, 9)
    acc = None
    for k in range(9):
        kh, kw = divmod(k, 3)
        off = kh * wpad + kw
        tap = h1[:, off:off + lo] * wd[:, k:k + 1]
        acc = tap if acc is None else acc + tap
    h2 = jnp.maximum(acc + b2_ref[...], 0.0)   # (Hid, Lo)

    # ---- 3) 1x1 project + BN (MXU) (+ fused residual) ----
    y = jnp.dot(w3t_ref[...], h2, preferred_element_type=jnp.float32)
    y = y + b3_ref[...]
    if use_res:
        # Residual = unpadded input = interior of xp, i.e. the same flat slab
        # shifted by one padded row + one padded column.
        y = y + x[:, wpad + 1:wpad + 1 + lo]

    o_ref[...] = y.astype(o_ref.dtype)


# ------------------------------ host wrapper -------------------------------- #

def inverted_residual(x_nchw, fparams, *, inp, oup, stride):
    assert stride in (1, 2)
    use_res = (stride == 1) and (inp == oup)
    n, cin, h, w = x_nchw.shape
    assert cin == inp
    hid = fparams["w1t"].shape[0]

    wpad = w + 2                 # 1-column halo each side
    hpad = h + 3                 # 1-row halo top, 2 bottom (flat-slice headroom)
    lp = hpad * wpad
    lo = h * wpad                # full-resolution, row-padded output length

    # Pad only the small pre-expansion input; flatten spatial onto the lane axis.
    xp = jnp.pad(x_nchw, ((0, 0), (0, 0), (1, 2), (1, 1))).reshape(n, cin, lp)

    # Halo-validity mask, built once outside the kernel (no in-kernel iotas).
    rr = jnp.arange(hpad, dtype=jnp.int32)[:, None]
    cc = jnp.arange(wpad, dtype=jnp.int32)[None, :]
    mask = (((rr >= 1) & (rr <= h) & (cc >= 1) & (cc <= w))
            .astype(x_nchw.dtype).reshape(1, lp))

    kernel = functools.partial(_fused_ir_kernel, wpad=wpad, use_res=use_res)

    out_full = pl.pallas_call(
        kernel,
        out_shape=jax.ShapeDtypeStruct((n, oup, lo), x_nchw.dtype),
        grid_spec=pltpu.PrefetchScalarGridSpec(
            num_scalar_prefetch=0,
            grid=(n,),                                     # one step per image
            in_specs=[
                pl.BlockSpec((None, cin, lp), lambda b: (b, 0, 0)),
                pl.BlockSpec((1, lp), lambda b: (0, 0)),
                pl.BlockSpec((hid, cin), lambda b: (0, 0)),
                pl.BlockSpec((hid, 1), lambda b: (0, 0)),
                pl.BlockSpec((hid, 9), lambda b: (0, 0)),
                pl.BlockSpec((hid, 1), lambda b: (0, 0)),
                pl.BlockSpec((oup, hid), lambda b: (0, 0)),
                pl.BlockSpec((oup, 1), lambda b: (0, 0)),
            ],
            out_specs=pl.BlockSpec((None, oup, lo), lambda b: (b, 0, 0)),
        ),
        compiler_params=pltpu.CompilerParams(
            dimension_semantics=("parallel",)),            # v7x: 2 TCs share N
    )(xp, mask, fparams["w1t"], fparams["b1"], fparams["wd9"], fparams["b2"],
      fparams["w3t"], fparams["b3"])

    # Crop the 2 pad columns and apply the stride with one cheap XLA slice;
    # the result is already NCHW (no transposes anywhere).
    out = out_full.reshape(n, oup, h, wpad)[:, :, :, :w]
    if stride > 1:
        out = out[:, :, ::stride, ::stride]
    return out


# ------------------------- parameter setup (no .pt) ------------------------- #

def _bn_params(c, base):
    idx = jnp.arange(c, dtype=jnp.float32)
    gamma = 1.0 + 0.01 * idx
    beta = 0.02 * idx - 0.01 * base
    mean = 0.05 * jnp.sin(idx + base)
    var = 1.0 + 0.1 * jnp.cos(idx)
    return gamma, beta, mean, var


def make_params(key, inp, oup, expand_ratio):
    hidden = int(inp * expand_ratio)
    k1, k2, k3 = jax.random.split(key, 3)
    # PyTorch shapes: (hidden, inp, 1, 1), (hidden, 1, 3, 3), (oup, hidden, 1, 1)
    # Stored here as (Cin, Cout) for 1x1 convs and (3, 3, C) for the depthwise.
    w1 = 0.1 * jax.random.normal(k1, (inp, hidden), jnp.float32)
    wd = 0.1 * jax.random.normal(k2, (3, 3, hidden), jnp.float32)
    w3 = 0.1 * jax.random.normal(k3, (hidden, oup), jnp.float32)
    return dict(
        hidden=hidden,
        w1=w1, wd=wd, w3=w3,
        bn1=_bn_params(hidden, 0.0),
        bn2=_bn_params(hidden, 1.0),
        bn3=_bn_params(oup, 2.0),
    )


def _fold_bn(bn, eps=1e-3):
    gamma, beta, mean, var = bn
    scale = gamma / jnp.sqrt(var + eps)
    bias = beta - mean * scale
    return scale, bias


def fold_bn_into_weights(params, eps=1e-3):
    """Fold eval-mode BN into conv weights/biases ONCE, in kernel layout."""
    s1, b1 = _fold_bn(params["bn1"], eps)
    s2, b2 = _fold_bn(params["bn2"], eps)
    s3, b3 = _fold_bn(params["bn3"], eps)
    hid = params["w1"].shape[1]
    return dict(
        w1t=(params["w1"] * s1[None, :]).T,                      # (Hid, Cin)
        b1=b1[:, None],                                          # (Hid, 1)
        wd9=(params["wd"] * s2[None, None, :])
            .transpose(2, 0, 1).reshape(hid, 9),                 # (Hid, 9)
        b2=b2[:, None],                                          # (Hid, 1)
        w3t=(params["w3"] * s3[None, :]).T,                      # (Oup, Hid)
        b3=b3[:, None],                                          # (Oup, 1)
    )


# ------------------------------ pure-JAX reference -------------------------- #

def inverted_residual_ref(x_nchw, params, *, inp, oup, stride):
    use_res_connect = (stride == 1) and (inp == oup)
    hidden = params["hidden"]
    x = jnp.transpose(x_nchw, (0, 2, 3, 1))
    dn = ("NHWC", "HWIO", "NHWC")

    s1, b1 = _fold_bn(params["bn1"])
    w1 = (params["w1"] * s1[None, :]).reshape(1, 1, inp, hidden)
    h1 = lax.conv_general_dilated(x, w1, (1, 1), "VALID", dimension_numbers=dn)
    h1 = jnp.maximum(h1 + b1, 0.0)

    s2, b2 = _fold_bn(params["bn2"])
    wd = (params["wd"] * s2[None, None, :]).reshape(3, 3, 1, hidden)
    h2 = lax.conv_general_dilated(
        h1, wd, (stride, stride), [(1, 1), (1, 1)], dimension_numbers=dn,
        feature_group_count=hidden,
    )
    h2 = jnp.maximum(h2 + b2, 0.0)

    s3, b3 = _fold_bn(params["bn3"])
    w3 = (params["w3"] * s3[None, :]).reshape(1, 1, hidden, oup)
    out = lax.conv_general_dilated(h2, w3, (1, 1), "VALID",
                                   dimension_numbers=dn) + b3
    if use_res_connect:
        out = out + x
    return jnp.transpose(out, (0, 3, 1, 2))


# ----------------------------------- main ----------------------------------- #

if __name__ == "__main__":
    N, H, W = 2, 16, 16
    configs = [
        dict(inp=4, oup=4, stride=1, expand=6),   # residual path
        dict(inp=4, oup=8, stride=2, expand=6),   # stride-2, no residual
    ]

    key = jax.random.PRNGKey(0)
    for cfg in configs:
        key, kx, kp = jax.random.split(key, 3)
        x = jax.random.normal(kx, (N, cfg["inp"], H, W), jnp.float32)  # NCHW
        params = make_params(kp, cfg["inp"], cfg["oup"], cfg["expand"])
        fparams = fold_bn_into_weights(params)     # BN folded once, up front

        out = inverted_residual(x, fparams, inp=cfg["inp"], oup=cfg["oup"],
                                stride=cfg["stride"])
        out = jax.block_until_ready(out)

        ref = inverted_residual_ref(x, params, inp=cfg["inp"], oup=cfg["oup"],
                                    stride=cfg["stride"])
        ho = (H - 1) // cfg["stride"] + 1
        wo = (W - 1) // cfg["stride"] + 1
        assert out.shape == (N, cfg["oup"], ho, wo)
        # Tolerance accounts for possible bf16-pass MXU matmuls (kernel) and
        # XLA TPU conv precision (reference).
        assert jnp.allclose(out, ref, atol=5e-3, rtol=5e-3), cfg

    print("KERNEL_OK")
</pallas_src>

<mosaic_0001>
module attributes {stable_mosaic.version = 11 : i64} {
  func.func @_fused_ir_kernel(%arg0: i32, %arg1: memref<1x4x342xf32, #tpu.memory_space<vmem>>, %arg2: memref<1x342xf32, #tpu.memory_space<vmem>>, %arg3: memref<24x4xf32, #tpu.memory_space<vmem>>, %arg4: memref<24x1xf32, #tpu.memory_space<vmem>>, %arg5: memref<24x9xf32, #tpu.memory_space<vmem>>, %arg6: memref<24x1xf32, #tpu.memory_space<vmem>>, %arg7: memref<4x24xf32, #tpu.memory_space<vmem>>, %arg8: memref<4x1xf32, #tpu.memory_space<vmem>>, %arg9: memref<1x4x288xf32, #tpu.memory_space<vmem>>) attributes {dimension_semantics = [#tpu.dimension_semantics<parallel>], iteration_bounds = array<i64: 2>, scalar_prefetch = 0 : i64, scratch_operands = 0 : i64, tpu.core_type = #tpu.core_type<tc>, window_params = [{transform_indices = @transform_0, window_bounds = array<i64: 1, 4, 342>}, {pipeline_mode = #tpu.pipeline_mode<synchronous>, transform_indices = @transform_1, window_bounds = array<i64: 1, 342>}, {pipeline_mode = #tpu.pipeline_mode<synchronous>, transform_indices = @transform_2, window_bounds = array<i64: 24, 4>}, {pipeline_mode = #tpu.pipeline_mode<synchronous>, transform_indices = @transform_3, window_bounds = array<i64: 24, 1>}, {pipeline_mode = #tpu.pipeline_mode<synchronous>, transform_indices = @transform_4, window_bounds = array<i64: 24, 9>}, {pipeline_mode = #tpu.pipeline_mode<synchronous>, transform_indices = @transform_5, window_bounds = array<i64: 24, 1>}, {pipeline_mode = #tpu.pipeline_mode<synchronous>, transform_indices = @transform_6, window_bounds = array<i64: 4, 24>}, {pipeline_mode = #tpu.pipeline_mode<synchronous>, transform_indices = @transform_7, window_bounds = array<i64: 4, 1>}, {transform_indices = @transform_8, window_bounds = array<i64: 1, 4, 288>}]} {
    %c0 = arith.constant 0 : index
    %c0_0 = arith.constant 0 : index
    %c0_1 = arith.constant 0 : index
    %0 = vector.load %arg1[%c0, %c0_0, %c0_1] : memref<1x4x342xf32, #tpu.memory_space<vmem>>, vector<1x4x342xf32>
    %1 = vector.shape_cast %0 : vector<1x4x342xf32> to vector<4x342xf32>
    %c0_2 = arith.constant 0 : index
    %c0_3 = arith.constant 0 : index
    %2 = vector.load %arg3[%c0_2, %c0_3] : memref<24x4xf32, #tpu.memory_space<vmem>>, vector<24x4xf32>
    %cst = arith.constant dense<0.000000e+00> : vector<24x342xf32>
    %3 = tpu.matmul %2, %1, %cst {dimension_numbers = #tpu.dot_dimension_numbers<[1], [0], [0], [1], [0, 0, 1, 1], [], []>} : vector<24x4xf32>, vector<4x342xf32>, vector<24x342xf32> -> vector<24x342xf32>
    %c0_4 = arith.constant 0 : index
    %c0_5 = arith.constant 0 : index
    %4 = vector.load %arg4[%c0_4, %c0_5] : memref<24x1xf32, #tpu.memory_space<vmem>>, vector<24x1xf32>
    %5 = vector.broadcast %4 : vector<24x1xf32> to vector<24x342xf32>
    %6 = arith.addf %3, %5 : vector<24x342xf32>
    %cst_6 = arith.constant 0.000000e+00 : f32
    %7 = vector.broadcast %cst_6 : f32 to vector<24x342xf32>
    %8 = arith.maximumf %6, %7 : vector<24x342xf32>
    %c0_7 = arith.constant 0 : index
    %c0_8 = arith.constant 0 : index
    %9 = vector.load %arg2[%c0_7, %c0_8] : memref<1x342xf32, #tpu.memory_space<vmem>>, vector<1x342xf32>
    %10 = vector.broadcast %9 : vector<1x342xf32> to vector<24x342xf32>
    %11 = arith.mulf %8, %10 : vector<24x342xf32>
    %c0_9 = arith.constant 0 : index
    %c0_10 = arith.constant 0 : index
    %12 = vector.load %arg5[%c0_9, %c0_10] : memref<24x9xf32, #tpu.memory_space<vmem>>, vector<24x9xf32>
    %13 = vector.extract_strided_slice %11 {offsets = [0, 0], sizes = [24, 288], strides = [1, 1]} : vector<24x342xf32> to vector<24x288xf32>
    %14 = vector.extract_strided_slice %12 {offsets = [0, 0], sizes = [24, 1], strides = [1, 1]} : vector<24x9xf32> to vector<24x1xf32>
    %15 = vector.broadcast %14 : vector<24x1xf32> to vector<24x288xf32>
    %16 = arith.mulf %13, %15 : vector<24x288xf32>
    %17 = vector.extract_strided_slice %11 {offsets = [0, 1], sizes = [24, 288], strides = [1, 1]} : vector<24x342xf32> to vector<24x288xf32>
    %18 = vector.extract_strided_slice %12 {offsets = [0, 1], sizes = [24, 1], strides = [1, 1]} : vector<24x9xf32> to vector<24x1xf32>
    %19 = vector.broadcast %18 : vector<24x1xf32> to vector<24x288xf32>
    %20 = arith.mulf %17, %19 : vector<24x288xf32>
    %21 = arith.addf %16, %20 : vector<24x288xf32>
    %22 = vector.extract_strided_slice %11 {offsets = [0, 2], sizes = [24, 288], strides = [1, 1]} : vector<24x342xf32> to vector<24x288xf32>
    %23 = vector.extract_strided_slice %12 {offsets = [0, 2], sizes = [24, 1], strides = [1, 1]} : vector<24x9xf32> to vector<24x1xf32>
    %24 = vector.broadcast %23 : vector<24x1xf32> to vector<24x288xf32>
    %25 = arith.mulf %22, %24 : vector<24x288xf32>
    %26 = arith.addf %21, %25 : vector<24x288xf32>
    %27 = vector.extract_strided_slice %11 {offsets = [0, 18], sizes = [24, 288], strides = [1, 1]} : vector<24x342xf32> to vector<24x288xf32>
    %28 = vector.extract_strided_slice %12 {offsets = [0, 3], sizes = [24, 1], strides = [1, 1]} : vector<24x9xf32> to vector<24x1xf32>
    %29 = vector.broadcast %28 : vector<24x1xf32> to vector<24x288xf32>
    %30 = arith.mulf %27, %29 : vector<24x288xf32>
    %31 = arith.addf %26, %30 : vector<24x288xf32>
    %32 = vector.extract_strided_slice %11 {offsets = [0, 19], sizes = [24, 288], strides = [1, 1]} : vector<24x342xf32> to vector<24x288xf32>
    %33 = vector.extract_strided_slice %12 {offsets = [0, 4], sizes = [24, 1], strides = [1, 1]} : vector<24x9xf32> to vector<24x1xf32>
    %34 = vector.broadcast %33 : vector<24x1xf32> to vector<24x288xf32>
    %35 = arith.mulf %32, %34 : vector<24x288xf32>
    %36 = arith.addf %31, %35 : vector<24x288xf32>
    %37 = vector.extract_strided_slice %11 {offsets = [0, 20], sizes = [24, 288], strides = [1, 1]} : vector<24x342xf32> to vector<24x288xf32>
    %38 = vector.extract_strided_slice %12 {offsets = [0, 5], sizes = [24, 1], strides = [1, 1]} : vector<24x9xf32> to vector<24x1xf32>
    %39 = vector.broadcast %38 : vector<24x1xf32> to vector<24x288xf32>
    %40 = arith.mulf %37, %39 : vector<24x288xf32>
    %41 = arith.addf %36, %40 : vector<24x288xf32>
    %42 = vector.extract_strided_slice %11 {offsets = [0, 36], sizes = [24, 288], strides = [1, 1]} : vector<24x342xf32> to vector<24x288xf32>
    %43 = vector.extract_strided_slice %12 {offsets = [0, 6], sizes = [24, 1], strides = [1, 1]} : vector<24x9xf32> to vector<24x1xf32>
    %44 = vector.broadcast %43 : vector<24x1xf32> to vector<24x288xf32>
    %45 = arith.mulf %42, %44 : vector<24x288xf32>
    %46 = arith.addf %41, %45 : vector<24x288xf32>
    %47 = vector.extract_strided_slice %11 {offsets = [0, 37], sizes = [24, 288], strides = [1, 1]} : vector<24x342xf32> to vector<24x288xf32>
    %48 = vector.extract_strided_slice %12 {offsets = [0, 7], sizes = [24, 1], strides = [1, 1]} : vector<24x9xf32> to vector<24x1xf32>
    %49 = vector.broadcast %48 : vector<24x1xf32> to vector<24x288xf32>
    %50 = arith.mulf %47, %49 : vector<24x288xf32>
    %51 = arith.addf %46, %50 : vector<24x288xf32>
    %52 = vector.extract_strided_slice %11 {offsets = [0, 38], sizes = [24, 288], strides = [1, 1]} : vector<24x342xf32> to vector<24x288xf32>
    %53 = vector.extract_strided_slice %12 {offsets = [0, 8], sizes = [24, 1], strides = [1, 1]} : vector<24x9xf32> to vector<24x1xf32>
    %54 = vector.broadcast %53 : vector<24x1xf32> to vector<24x288xf32>
    %55 = arith.mulf %52, %54 : vector<24x288xf32>
    %56 = arith.addf %51, %55 : vector<24x288xf32>
    %c0_11 = arith.constant 0 : index
    %c0_12 = arith.constant 0 : index
    %57 = vector.load %arg6[%c0_11, %c0_12] : memref<24x1xf32, #tpu.memory_space<vmem>>, vector<24x1xf32>
    %58 = vector.broadcast %57 : vector<24x1xf32> to vector<24x288xf32>
    %59 = arith.addf %56, %58 : vector<24x288xf32>
    %cst_13 = arith.constant 0.000000e+00 : f32
    %60 = vector.broadcast %cst_13 : f32 to vector<24x288xf32>
    %61 = arith.maximumf %59, %60 : vector<24x288xf32>
    %c0_14 = arith.constant 0 : index
    %c0_15 = arith.constant 0 : index
    %62 = vector.load %arg7[%c0_14, %c0_15] : memref<4x24xf32, #tpu.memory_space<vmem>>, vector<4x24xf32>
    %cst_16 = arith.constant dense<0.000000e+00> : vector<4x288xf32>
    %63 = tpu.matmul %62, %61, %cst_16 {dimension_numbers = #tpu.dot_dimension_numbers<[1], [0], [0], [1], [0, 0, 1, 1], [], []>} : vector<4x24xf32>, vector<24x288xf32>, vector<4x288xf32> -> vector<4x288xf32>
    %c0_17 = arith.constant 0 : index
    %c0_18 = arith.constant 0 : index
    %64 = vector.load %arg8[%c0_17, %c0_18] : memref<4x1xf32, #tpu.memory_space<vmem>>, vector<4x1xf32>
    %65 = vector.broadcast %64 : vector<4x1xf32> to vector<4x288xf32>
    %66 = arith.addf %63, %65 : vector<4x288xf32>
    %67 = vector.extract_strided_slice %1 {offsets = [0, 19], sizes = [4, 288], strides = [1, 1]} : vector<4x342xf32> to vector<4x288xf32>
    %68 = arith.addf %66, %67 : vector<4x288xf32>
    %c0_19 = arith.constant 0 : index
    %c0_20 = arith.constant 0 : index
    %c0_21 = arith.constant 0 : index
    %69 = vector.load %arg9[%c0_19, %c0_20, %c0_21] : memref<1x4x288xf32, #tpu.memory_space<vmem>>, vector<1x4x288xf32>
    %70 = vector.shape_cast %69 : vector<1x4x288xf32> to vector<4x288xf32>
    %71 = vector.shape_cast %68 : vector<4x288xf32> to vector<1x4x288xf32>
    tpu.vector_store %arg9[%c0_19, %c0_20, %c0_21], %71 {strides = array<i32>} : memref<1x4x288xf32, #tpu.memory_space<vmem>>, vector<1x4x288xf32>,
    return
  }
  func.func @transform_0(%arg0: i32) -> (i32, i32, i32) {
    %c0_i32 = arith.constant 0 : i32
    %c0_i32_0 = arith.constant 0 : i32
    %c0_i32_1 = arith.constant 0 : i32
    return %arg0, %c0_i32, %c0_i32_0 : i32, i32, i32
  }
  func.func @transform_1(%arg0: i32) -> (i32, i32) {
    %c0_i32 = arith.constant 0 : i32
    %c0_i32_0 = arith.constant 0 : i32
    %c0_i32_1 = arith.constant 0 : i32
    return %c0_i32, %c0_i32_0 : i32, i32
  }
  func.func @transform_2(%arg0: i32) -> (i32, i32) {
    %c0_i32 = arith.constant 0 : i32
    %c0_i32_0 = arith.constant 0 : i32
    %c0_i32_1 = arith.constant 0 : i32
    return %c0_i32, %c0_i32_0 : i32, i32
  }
  func.func @transform_3(%arg0: i32) -> (i32, i32) {
    %c0_i32 = arith.constant 0 : i32
    %c0_i32_0 = arith.constant 0 : i32
    %c0_i32_1 = arith.constant 0 : i32
    return %c0_i32, %c0_i32_0 : i32, i32
  }
  func.func @transform_4(%arg0: i32) -> (i32, i32) {
    %c0_i32 = arith.constant 0 : i32
    %c0_i32_0 = arith.constant 0 : i32
    %c0_i32_1 = arith.constant 0 : i32
    return %c0_i32, %c0_i32_0 : i32, i32
  }
  func.func @transform_5(%arg0: i32) -> (i32, i32) {
    %c0_i32 = arith.constant 0 : i32
    %c0_i32_0 = arith.constant 0 : i32
    %c0_i32_1 = arith.constant 0 : i32
    return %c0_i32, %c0_i32_0 : i32, i32
  }
  func.func @transform_6(%arg0: i32) -> (i32, i32) {
    %c0_i32 = arith.constant 0 : i32
    %c0_i32_0 = arith.constant 0 : i32
    %c0_i32_1 = arith.constant 0 : i32
    return %c0_i32, %c0_i32_0 : i32, i32
  }
  func.func @transform_7(%arg0: i32) -> (i32, i32) {
    %c0_i32 = arith.constant 0 : i32
    %c0_i32_0 = arith.constant 0 : i32
    %c0_i32_1 = arith.constant 0 : i32
    return %c0_i32, %c0_i32_0 : i32, i32
  }
  func.func @transform_8(%arg0: i32) -> (i32, i32, i32) {
    %c0_i32 = arith.constant 0 : i32
    %c0_i32_0 = arith.constant 0 : i32
    %c0_i32_1 = arith.constant 0 : i32
    return %arg0, %c0_i32, %c0_i32_0 : i32, i32, i32
  }
}

</mosaic_0001>

<bundles_post_ra>
// kernel: tpu_custom_call.1
= control target key start
LH: loop header
LB: loop body
LE: loop exit
PB: predicated region body
PF: predicated region fallthrough
CT: control target
= control target key end

     0   :  { %13 = vsyncpa [#allocation3], 0  ;;  %s2418_s0 = inlined_call_operand.vmem [shape: f32[2,4,342], index: 0, kind: input, shape index: {}]   ;;  %s2419_s1 = inlined_call_operand.vmem [shape: f32[1,342], index: 1, kind: input, shape index: {}]   ;;  %s2420_s2 = inlined_call_operand.vmem [shape: f32[24,4], index: 2, kind: input, shape index: {}]   ;;  %s2421_s3 = inlined_call_operand.vmem [shape: f32[24,1], index: 3, kind: input, shape index: {}]   ;;  %s2422_s4 = inlined_call_operand.vmem [shape: f32[24,9], index: 4, kind: input, shape index: {}]   ;;  %s2423_s5 = inlined_call_operand.vmem [shape: f32[24,1], index: 5, kind: input, shape index: {}]   ;;  %s2424_s6 = inlined_call_operand.vmem [shape: f32[4,24], index: 6, kind: input, shape index: {}]   ;;  %s2425_s7 = inlined_call_operand.vmem [shape: f32[4,1], index: 7, kind: input, shape index: {}]   ;;  %s2426_s8 = inlined_call_operand.hbm [shape: f32[2,4,288], index: 8, kind: output, shape index: {}]  }
   0x1   :  { %15 = vsyncpa [#allocation3 + $0x1], 0  ;;  %s1711_s27 = smov 0   ;;  %s1713_s28 = smov 0  }
   0x2   :  { %s1715_s29 = smov 0   ;;  %s1717_s30 = smov 0  }
   0x3 LB: > { %s1732_s9 = sadd.s32 4294967295, %s1643_s30   ;;  %s1439_s10 = sadd.s32 4294967294, %s1643_s30   ;;  %s1643_s30 = sphi %s1717_s30, %s2432_s30   ;;  %s1639_s29 = sphi %s1715_s29, %s2431_s29   ;;  %s1635_s28 = sphi %s1713_s28, %s2430_s28   ;;  %s1631_s27 = sphi %s1711_s27, %s2429_s27  }
   0x4   : > { %s1736_s11 = sadd.s32 1, %s1643_s30   ;;  %s201_s12 = sadd.s32 1, %s1639_s29 }
   0x5   : > { %s198_s13 = ssub.s32 %s1643_s30, %s1736_s11  ;;  %p211_p0 = scmp.ne.s32.totalorder %s1639_s29, %s1635_s28 }
   0x6   : > { %p199_p1 = scmp.eq.s32.totalorder %s198_s13, 0  ;;  %p212_p2 = scmp.eq.s32.totalorder %s1732_s9, 1 }
   0x7   : > { %p217_p3 = scmp.ne.s32.totalorder %s1635_s28, %s1631_s27  ;;  %p218_p4 = scmp.eq.s32.totalorder %s1439_s10, 1 }
   0x8   : > { %s1747_s14 = scalar_select %p199_p1, %s1639_s29, %s201_s12  }
   0x9   : > { %p1749_p5 = por %p212_p2, %p211_p0  ;;  %p1753_p6 = por %p218_p4, %p217_p3 }
   0xa   : > { %p1442_p7 = scmp.ge.s32.totalorder %s1643_s30, 1  ;;  %p265_p8 = scmp.lt.s32.totalorder %s1643_s30, 3 }
   0xc   : > { %p266_p9 = pnand %p1442_p7, %p265_p8 }
   0xd   : > { %p299_p10 = scmp.lt.s32.totalorder (!%p266_p9), %s1732_s9, 1  ;;  %v1645_v0 = vmov (!%p266_p9), 0.0   ;;  %vm1646_vm0 = vmmov (!%p266_p9), 0   ;;  %v311_v1 = vld [vmem:[%s2421_s3 + $0x10] sm:$0xff] (!%p266_p9)  ;;  %v1647_v2 = vmov (!%p266_p9), 0   ;;  %v1772_v3 = vld [vmem:[%s2422_s4 + $0x8] sm:$0xff] (!%p266_p9)  ;;  %v521_v47 = vlaneseq (!%p266_p9) }
   0xe   : > { %269 = sbr.rel (%p266_p9) target bundleno = 748 (0x2ec), region = 52  ;;  %1466 = vmatprep.subr.mxu1 (!%p266_p9), %v1645_v0  ;;  %1468 = vmatprep.mubr.msk.f32.mxu1 (!%p266_p9), %vm1646_vm0, %v1645_v0  ;;  %v1648_v4 = vmov (!%p266_p9), 1   ;;  %vm340_vm1 = vcmask (!%p266_p9), 1043456   ;;  %v1778_v5 = vld [vmem:[%s2422_s4] sm:$0xff] (!%p266_p9)  ;;  %vm330_vm2 = vcmask (!%p266_p9), 31744   ;;  %v1649_v10 = vmov (!%p266_p9), 3  }
   0xf   : > { %411 = vmatprep.mubr.f32.mxu0 (!%p266_p9), %v1645_v0  ;;  %1555 = vset.pattern.permute.xlu1 (!%p266_p9), %v1647_v2  ;;  %v306_v6 = vld [vmem:[%s2420_s2] sm:$0xff] (!%p266_p9)  ;;  %v307_v11 = vld [vmem:[%s2420_s2 + $0x8] sm:$0xff] (!%p266_p9)  ;;  %v1650_v12 = vmov (!%p266_p9), 2   ;;  %v308_v13 = vld [vmem:[%s2420_s2 + $0x10] sm:$0xff] (!%p266_p9)  ;;  %v1651_v14 = vmov (!%p266_p9), 4   ;;  %v1652_v15 = vmov (!%p266_p9), 5  }
  0x10   : > { %324 = vperm.xlu1 (!%p266_p9), %1555, %v311_v1   ;;  %1557 = vset.pattern.permute.xlu0 (!%p266_p9), %v1648_v4  ;;  %v547_v16 = vld [vmem:[%s2422_s4 + $0x10] sm:$0xff] (!%p266_p9)  ;;  %v1653_v17 = vmov (!%p266_p9), 6   ;;  %v1654_v18 = vmov (!%p266_p9), 8   ;;  %v1655_v19 = vmov (!%p266_p9), 7   ;;  %v309_v20 = vld [vmem:[%s2421_s3] sm:$0xff] (!%p266_p9)  ;;  %v310_v21 = vld [vmem:[%s2421_s3 + $0x8] sm:$0xff] (!%p266_p9) }
  0x11   : > { %577 = vperm.xlu0 (!%p266_p9), %1557, %v1772_v3   ;;  %v1157_v22 = vld [vmem:[%s2423_s5 + $0x8] sm:$0xff] (!%p266_p9)  ;;  %v1158_v23 = vld [vmem:[%s2423_s5 + $0x10] sm:$0xff] (!%p266_p9)  ;;  %v1156_v24 = vld [vmem:[%s2423_s5] sm:$0xff] (!%p266_p9)  ;;  %v522_v48 = vshrl.u32 (!%p266_p9), %v521_v47, 7  ;;  %s1657_s23 = smov (!%p266_p9), 127   ;;  %s1658_s24 = smov (!%p266_p9), 91  }
  0x12   : > { %v519_v52 = vld [vmem:[%s2419_s1] sm:$0x7] (!%p266_p9)  ;;  %s1659_s25 = smov (!%p266_p9), 126   ;;  %s1660_s26 = smov (!%p266_p9), 110   ;;  %vm620_vm3 = vcmask (!%p266_p9), 1039360   ;;  %vm693_vm4 = vcmask (!%p266_p9), 1031168  }
  0x13   : > { %v531_v51 = vsub.s32 (!%p266_p9), 2, %v522_v48  ;;  %v523_v55 = vsub.s32 (!%p266_p9), 0, %v522_v48  ;;  %v527_v60 = vsub.s32 (!%p266_p9), 1, %v522_v48  ;;  %s1662_s12 = smov (!%p266_p9), 92   ;;  %s1663_s13 = smov (!%p266_p9), 90   ;;  %vm766_vm5 = vcmask (!%p266_p9), 900096  }
  0x14   : > { %1556 = vset.pattern.permute.xlu1 (!%p266_p9), %v1648_v4  ;;  %vm839_vm6 = vcmask (!%p266_p9), 891904   ;;  %vm912_vm7 = vcmask (!%p266_p9), 883712   ;;  %vm985_vm8 = vcmask (!%p266_p9), 752640   ;;  %vm1058_vm9 = vcmask (!%p266_p9), 744448   ;;  %s296_s21 = sand.u32 (!%p266_p9), 1, %s1635_s28  }
  0x15   : > { %s300_s19 = scalar_select %p299_p10, %s1732_s9, 1  ;;  %573 = vperm.xlu1 %1556, %v1778_v5   ;;  %1559 = vset.pattern.permute.xlu0 %v1649_v10  ;;  %v1909_v57 = vrot.slane %v519_v52, %v531_v51  ;;  %v1913_v1 = vrot.slane %v519_v52, %v523_v55  ;;  %vm1131_vm10 = vcmask 736256   ;;  %vm1199_vm11 = vcmask 195584  }
  0x16   : > { %719 = vperm.xlu0 %1559, %v1778_v5   ;;  %vm1363_vm12 = vcmask 257024  }
  0x17   : > { %s1494_s22 = smul.u32 12, %s300_s19 }
  0x19   : > { %s303_s10 = scalar_lea.vmem %s2418_s0, %s1494_s22  ;;  %1558 = vset.pattern.permute.xlu1 %v1650_v12  ;;  %s1656_s22 = smov 108  }
  0x1a   : > { %v1786_v7 = vld [vmem:[%s303_s10 + $0x8] sm:$0xf]  ;;  %v1788_v8 = vld [vmem:[%s303_s10] sm:$0xff]  ;;  %646 = vperm.xlu1 %1558, %v1778_v5   ;;  %1562 = vset.pattern.permute.xlu0 %v1651_v14  ;;  %s1661_s10 = smov 109  }
  0x1b   : > { %1467 = vmatpush3.msk.msra.mxu1 %vm340_vm1, %v1786_v7  ;;  %v1794_v9 = vcombine.high %v1788_v8, %v1788_v8  ;;  %792 = vperm.xlu0 %1562, %v1778_v5  }
  0x1c   : > { %1469 = vmatmul.mubr.msk.f32.vlgmr.msra.gmra.mrb[0].mxu1 %vm330_vm2, %v306_v6 }
  0x1d   : > { %1444 = vmatprep.subr.msk.mxu0 %vm340_vm1, %v1794_v9  ;;  %1471 = vmatprep.mubr.msk.f32.mxu1 %vm1646_vm0, %v1645_v0 }
  0x1e   : > { %1445 = vmatpush1.msk.msra.mxu0 %vm340_vm1, %v1788_v8  ;;  %650 = vperm.xlu1 %1558, %v1772_v3  }
  0x1f   : > { %1446 = vmatmul.mubr.msk.f32.vlgmr.msra.gmra.mrb[0].mxu0 %vm330_vm2, %v306_v6  ;;  %1565 = vset.pattern.permute.xlu0 %v1652_v15  ;;  %v1920_v6 = vrot.slane %v519_v52, %v527_v60 }
  0x20   : > { %1472 = vmatmul.mubr.msk.f32.gmra.mrb[2].mxu1 %vm330_vm2, %v307_v11  ;;  %417 = vmatprep.mubr.f32.mxu0 %v1645_v0 }
  0x21   : > { %1474 = vmatprep.mubr.msk.f32.mxu1 %vm1646_vm0, %v1645_v0  ;;  %865 = vperm.xlu0 %1565, %v1778_v5  }
  0x22   : > { %1560 = vset.pattern.permute.xlu1 %v1649_v10 }
  0x23   : > { %1447 = vmatmul.mubr.msk.f32.gmra.mrb[2].mxu0 %vm330_vm2, %v307_v11  ;;  %723 = vperm.xlu1 %1560, %v1772_v3  }
  0x24   : > { %1475 = vmatmul.mubr.msk.f32.gmra.mrb[4].mxu1 %vm330_vm2, %v308_v13  ;;  %423 = vmatprep.mubr.f32.mxu0 %v1645_v0 }
  0x25   : > { %1483 = vmatprep.mubr.msk.f32.mxu1 %vm1646_vm0, %v1645_v0  ;;  %1568 = vset.pattern.permute.xlu0 %v1653_v17 }
  0x26   : > { %938 = vperm.xlu0 %1568, %v1778_v5  }
  0x27   : > { %1448 = vmatmul.mubr.msk.f32.gmra.mrb[4].mxu0 %vm330_vm2, %v308_v13  ;;  %1561 = vset.pattern.permute.xlu1 %v1648_v4 }
  0x28   : > { %1267 = vmatprep.mubr.f32.mxu0 %v1645_v0  ;;  %581 = vperm.xlu1 %1561, %v547_v16  }
  0x2a   : > { %1573 = vset.pattern.permute.xlu0 %v1654_v18 }
  0x2b   : > { %1084 = vperm.xlu0 %1573, %v1778_v5  }
  0x2c   : > { %1563 = vset.pattern.permute.xlu1 %v1651_v14 }
  0x2d   : > { %796 = vperm.xlu1 %1563, %v1772_v3  }
  0x2f   : > { %1574 = vset.pattern.permute.xlu0 %v1655_v19 }
  0x30   : > { %1011 = vperm.xlu0 %1574, %v1778_v5  }
  0x31   : > { %1564 = vset.pattern.permute.xlu1 %v1650_v12 }
  0x32   : > { %654 = vperm.xlu1 %1564, %v547_v16  }
  0x34   : > { %1019 = vperm.xlu0 %1574, %v547_v16  }
  0x36   : > { %1566 = vset.pattern.permute.xlu1 %v1652_v15 }
  0x37   : > { %869 = vperm.xlu1 %1566, %v1772_v3  }
  0x38   : > { %1577 = vset.pattern.permute.xlu0 %v1647_v2 }
  0x39   : > { %314 = vperm.xlu0 %1577, %v309_v20  }
  0x3b   : > { %1567 = vset.pattern.permute.xlu1 %v1649_v10 }
  0x3c   : > { %727 = vperm.xlu1 %1567, %v547_v16  }
  0x3d   : > { %319 = vperm.xlu0 %1577, %v310_v21  }
  0x40   : > { %1569 = vset.pattern.permute.xlu1 %v1653_v17 }
  0x41   : > { %942 = vperm.xlu1 %1569, %v1772_v3   ;;  %555 = vperm.xlu0 %1577, %v1772_v3  }
  0x45   : > { %1570 = vset.pattern.permute.xlu1 %v1651_v14  ;;  %1166 = vperm.xlu0 %1577, %v1157_v22  }
  0x46   : > { %800 = vperm.xlu1 %1570, %v547_v16  }
  0x49   : > { %1171 = vperm.xlu0 %1577, %v1158_v23  }
  0x4a   : > { %1571 = vset.pattern.permute.xlu1 %v1655_v19 }
  0x4b   : > { %1015 = vperm.xlu1 %1571, %v1772_v3  }
  0x4f   : > { %1572 = vset.pattern.permute.xlu1 %v1652_v15 }
  0x50   : > { %873 = vperm.xlu1 %1572, %v547_v16  }
  0x54   : > { %1575 = vset.pattern.permute.xlu1 %v1654_v18 }
  0x55   : > { %1088 = vperm.xlu1 %1575, %v1772_v3  }
  0x59   : > { %1576 = vset.pattern.permute.xlu1 %v1653_v17 }
  0x5a   : > { %946 = vperm.xlu1 %1576, %v547_v16  }
  0x5e   : > { %1578 = vset.pattern.permute.xlu1 %v1654_v18 }
  0x5f   : > { %1092 = vperm.xlu1 %1578, %v547_v16  }
  0x63   : > { %1579 = vset.pattern.permute.xlu1 %v1647_v2 }
  0x64   : > { %550 = vperm.xlu1 %1579, %v1778_v5  }
  0x68   : > { %560 = vperm.xlu1 %1579, %v547_v16  }
  0x6c   : > { %1161 = vperm.xlu1 %1579, %v1156_v24  }
  0x8f   : > { %v1858_v25 = vpop.permute.xlu1 %324 }
  0x90   : > { %v1874_v33 = vpop.permute.xlu0 %577 }
  0x94   : > { %v1860_v26 = vpop.permute.xlu1 %573 }
  0x95   : > { %v1878_v35 = vpop.permute.xlu0 %719 }
  0x99   : > { %v1862_v27 = vpop.permute.xlu1 %646 }
  0x9a   : > { %v1882_v37 = vpop.permute.xlu0 %792 }
  0x9d   : > { %v1864_v28 = vpop.permute.xlu1 %650 }
  0xa0   : > { %v1886_v39 = vpop.permute.xlu0 %865 }
  0xa2   : > { %v1866_v29 = vpop.permute.xlu1 %723 }
  0xa5   : > { %v1890_v41 = vpop.permute.xlu0 %938 }
  0xa7   : > { %v1868_v30 = vpop.permute.xlu1 %581 }
  0xaa   : > { %v1894_v43 = vpop.permute.xlu0 %1084 }
  0xac   : > { %v1870_v31 = vpop.permute.xlu1 %796 }
  0xaf   : > { %v1898_v45 = vpop.permute.xlu0 %1011 }
  0xb1   : > { %v1872_v32 = vpop.permute.xlu1 %654 }
  0xb3   : > { %v1902_v49 = vpop.permute.xlu0 %1019 }
  0xb6   : > { %v1876_v34 = vpop.permute.xlu1 %869 }
  0xb8   : > { %v315_v53 = vpop.permute.xlu0 %314 }
  0xbb   : > { %v1880_v36 = vpop.permute.xlu1 %727 }
  0xc0   : > { %v1884_v38 = vpop.permute.xlu1 %942 }
  0xc5   : > { %v1888_v40 = vpop.permute.xlu1 %800 }
  0xca   : > { %v1892_v42 = vpop.permute.xlu1 %1015 }
  0xcf   : > { %v1896_v44 = vpop.permute.xlu1 %873 }
  0xd4   : > { %v1900_v46 = vpop.permute.xlu1 %1088 }
  0xd9   : > { %v1904_v50 = vpop.permute.xlu1 %946 }
  0xde   : > { %v1911_v59 = vpop.permute.xlu1 %1092 }
  0xe3   : > { %v1922_v13 = vpop.permute.xlu1 %550 }
  0xe7   : > { %v561_v55 = vpop.permute.xlu1 %560 }
  0xef   : > { %v496_v54 = vpop.f32.mrb[0].mxu1 }
  0xf0   : > { %v497_v56 = vadd.f32 %v496_v54, %v315_v53  ;;  %v1470_v58 = vpop.f32.mrb[1].mxu1 }
  0xf2   : > { %v512_v61 = vmax.f32 %v497_v56, 0.0  ;;  %v413_v62 = vpop.f32.mrb[0].mxu0 }
  0xf3   : > { %v414_v63 = vadd.f32 %v413_v62, %v315_v53  ;;  %v415_v2 = vpop.f32.mrb[1].mxu0  ;;  %v1915_v3 = vpop.f32.mrb[2].mxu1 }
  0xf4   : > { %v1918_v4 = vmul.f32 %v1909_v57, %v512_v61  ;;  %v416_v5 = vadd.f32 %v415_v2, %v315_v53  ;;  %v1473_v10 = vpop.f32.mrb[3].mxu1 }
  0xf5   : > { %v510_v11 = vmax.f32 %v414_v63, 0.0 }
  0xf6   : > { %v511_v12 = vmax.f32 %v416_v5, 0.0  ;;  %v1924_v14 = vpop.f32.mrb[2].mxu0  ;;  %v878_v15 = vmul.f32 %v1886_v39, %v1918_v4  ;;  %v586_v19 = vmul.f32 %v1860_v26, %v1918_v4  ;;  %v1024_v51 = vmul.f32 %v1898_v45, %v1918_v4 }
  0xf7   : > { %v1929_v16 = vmul.f32 %v1913_v1, %v510_v11  ;;  %v1931_v17 = vpop.f32.mrb[3].mxu0  ;;  %v506_v18 = vpop.f32.mrb[4].mxu1  ;;  %v659_v54 = vmul.f32 %v1862_v27, %v1918_v4 }
  0xf8   : > { %v1936_v20 = vmul.f32 %v1920_v6, %v511_v12  ;;  %v507_v21 = vadd.f32 %v506_v18, %v1858_v25  ;;  %898 = vrot.lane.b32.xlu1 %v878_v15, %s1656_s22  ;;  %v1476_v22 = vpop.f32.mrb[5].mxu1  ;;  %606 = vrot.lane.b32.xlu0 %v586_v19, %s1657_s23  ;;  %v805_v15 = vmul.f32 %v1882_v37, %v1918_v4 }
  0xf9   : > { %v1942_v23 = vmul.f32 %v1922_v13, %v1929_v16  ;;  %v584_v63 = vmul.f32 %v1860_v26, %v1929_v16  ;;  %v657_v12 = vmul.f32 %v1862_v27, %v1929_v16  ;;  %v730_v18 = vmul.f32 %v1878_v35, %v1929_v16 }
  0xfa   : > { %v1947_v24 = vmul.f32 %v1922_v13, %v1936_v20  ;;  %v518_v47 = vmax.f32 %v507_v21, 0.0  ;;  %v425_v48 = vpop.f32.mrb[4].mxu0  ;;  %v951_v19 = vmul.f32 %v1890_v41, %v1918_v4  ;;  %v876_v21 = vmul.f32 %v1886_v39, %v1929_v16 }
  0xfb   : > { %v426_v52 = vadd.f32 %v425_v48, %v1858_v25  ;;  %v427_v53 = vpop.f32.mrb[5].mxu0 }
  0xfc   : > { %v1955_v56 = vmul.f32 %v1909_v57, %v518_v47  ;;  %v428_v58 = vadd.f32 %v427_v53, %v1858_v25  ;;  %1044 = vrot.lane.b32.xlu1 %v1024_v51, %s1658_s24  ;;  %679 = vrot.lane.b32.xlu0 %v659_v54, %s1659_s25  ;;  %v732_v25 = vmul.f32 %v1878_v35, %v1918_v4 }
  0xfd   : > { %v516_v60 = vmax.f32 %v426_v52, 0.0  ;;  %v1097_v47 = vmul.f32 %v1894_v43, %v1918_v4  ;;  %v320_v52 = vpop.permute.xlu0 %319  ;;  %v1022_v53 = vmul.f32 %v1898_v45, %v1929_v16 }
  0xfe   : > { %v517_v61 = vmax.f32 %v428_v58, 0.0  ;;  %v1961_v62 = vmul.f32 %v561_v55, %v1955_v56  ;;  %v502_v54 = vadd.f32 %v1915_v3, %v320_v52  ;;  %v585_v58 = vmul.f32 %v1860_v26, %v1936_v20 }
  0xff   : > { %v1966_v2 = vmul.f32 %v1913_v1, %v516_v60  ;;  %v658_v3 = vmul.f32 %v1862_v27, %v1936_v20  ;;  %v731_v26 = vmul.f32 %v1878_v35, %v1936_v20  ;;  %v804_v27 = vmul.f32 %v1882_v37, %v1936_v20 }
 0x100   : > { %v1971_v5 = vmul.f32 %v1920_v6, %v517_v61  ;;  %602 = vrot.lane.b32.xlu1 %v584_v63, %s1657_s23  ;;  %752 = vrot.lane.b32.xlu0 %v732_v25, %s1660_s26  ;;  %v515_v60 = vmax.f32 %v502_v54, 0.0  ;;  %v949_v61 = vmul.f32 %v1890_v41, %v1929_v16  ;;  %v1095_v25 = vmul.f32 %v1894_v43, %v1929_v16 }
 0x101   : > { %v1975_v10 = vmul.f32 %v561_v55, %v1966_v2  ;;  %v1997_v22 = vmul.f32 %v1888_v40, %v1966_v2  ;;  %v422_v54 = vadd.f32 %v1931_v17, %v320_v52 }
 0x102   : > { %v1979_v11 = vmul.f32 %v561_v55, %v1971_v5  ;;  %v2004_v48 = vmul.f32 %v1888_v40, %v1971_v5  ;;  %v2009_v51 = vmul.f32 %v1896_v44, %v1971_v5  ;;  %v803_v55 = vmul.f32 %v1882_v37, %v1929_v16 }
 0x103   : > { %v2027_v63 = vmul.f32 %v1909_v57, %v515_v60  ;;  %v950_v37 = vmul.f32 %v1890_v41, %v1936_v20 }
 0x104   : > { %675 = vrot.lane.b32.xlu1 %v657_v12, %s1659_s25  ;;  %825 = vrot.lane.b32.xlu0 %v805_v15, %s1661_s10  ;;  %v420_v15 = vadd.f32 %v1924_v14, %v320_v52  ;;  %v1096_v14 = vmul.f32 %v1894_v43, %v1936_v20  ;;  %v514_v43 = vmax.f32 %v422_v54, 0.0  ;;  %v1028_v54 = vmul.f32 %v1902_v49, %v1966_v2 }
 0x105   : > { %v589_v12 = vmul.f32 %v1874_v33, %v2027_v63  ;;  %v662_v57 = vmul.f32 %v1864_v28, %v2027_v63  ;;  %v881_v35 = vmul.f32 %v1876_v34, %v2027_v63  ;;  %v735_v16 = vmul.f32 %v1866_v29, %v2027_v63 }
 0x106   : > { %v1100_v60 = vmul.f32 %v1900_v46, %v2027_v63  ;;  %v2087_v17 = vmul.f32 %v1920_v6, %v514_v43 }
 0x108   : > { %748 = vrot.lane.b32.xlu1 %v730_v18, %s1660_s26  ;;  %971 = vrot.lane.b32.xlu0 %v951_v19, %s1662_s12  ;;  %v808_v18 = vmul.f32 %v1870_v31, %v2027_v63  ;;  %v513_v19 = vmax.f32 %v420_v15, 0.0  ;;  %v588_v52 = vmul.f32 %v1874_v33, %v2087_v17  ;;  %v661_v6 = vmul.f32 %v1864_v28, %v2087_v17 }
 0x109   : > { %v884_v15 = vmul.f32 %v1896_v44, %v1955_v56 }
 0x10a   : > { %v2065_v41 = vmul.f32 %v1913_v1, %v513_v19  ;;  %v1664_v1 = vmov 0.0|0.0   ;;  %v590_v19 = vmul.f32 %v1868_v30, %v1966_v2 }
 0x10b   : > { %1490 = vmatprep.subr.bf16.mxu1 %v1664_v1  ;;  %v664_v1 = vmul.f32 %v1872_v32, %v1971_v5 }
 0x10c   : > { %894 = vrot.lane.b32.xlu1 %v876_v21, %s1656_s22  ;;  %1117 = vrot.lane.b32.xlu0 %v1097_v47, %s1663_s13  ;;  %v1027_v21 = vmul.f32 %v1892_v42, %v2027_v63  ;;  %v877_v47 = vmul.f32 %v1886_v39, %v1936_v20  ;;  %v806_v39 = vmul.f32 %v1870_v31, %v2065_v41 }
 0x110   : > { %1040 = vrot.lane.b32.xlu1 %v1022_v53, %s1658_s24  ;;  %821 = vrot.lane.b32.xlu0 %v803_v55, %s1661_s10  ;;  %v954_v53 = vmul.f32 %v1884_v38, %v2027_v63  ;;  %v1023_v55 = vmul.f32 %v1898_v45, %v1936_v20  ;;  %v1098_v45 = vmul.f32 %v1900_v46, %v2065_v41 }
 0x111   : > { %v587_v20 = vmul.f32 %v1874_v33, %v2065_v41  ;;  %v734_v33 = vmul.f32 %v1866_v29, %v2087_v17 }
 0x114   : > { %604 = vrot.lane.b32.xlu1 %v585_v58, %s1657_s23  ;;  %967 = vrot.lane.b32.xlu0 %v949_v61, %s1662_s12  ;;  %v952_v58 = vmul.f32 %v1884_v38, %v2065_v41  ;;  %v660_v61 = vmul.f32 %v1864_v28, %v2065_v41  ;;  %v807_v28 = vmul.f32 %v1870_v31, %v2087_v17 }
 0x115   : > { %v953_v31 = vmul.f32 %v1884_v38, %v2087_v17  ;;  %v1099_v38 = vmul.f32 %v1900_v46, %v2087_v17  ;;  %v1030_v46 = vmul.f32 %v1902_v49, %v1955_v56 }
 0x118   : > { %677 = vrot.lane.b32.xlu1 %v658_v3, %s1659_s25  ;;  %1113 = vrot.lane.b32.xlu0 %v1095_v25, %s1663_s13  ;;  %v733_v3 = vmul.f32 %v1866_v29, %v2065_v41  ;;  %v879_v25 = vmul.f32 %v1876_v34, %v2065_v41  ;;  %v665_v29 = vmul.f32 %v1872_v32, %v1955_v56 }
 0x11c   : > { %750 = vrot.lane.b32.xlu1 %v731_v26, %s1660_s26  ;;  %612 = vrot.lane.b32.xlu0 %v589_v12, %s1657_s23  ;;  %v1025_v26 = vmul.f32 %v1892_v42, %v2065_v41  ;;  %v592_v12 = vmul.f32 %v1868_v30, %v1955_v56 }
 0x120   : > { %823 = vrot.lane.b32.xlu1 %v804_v27, %s1661_s10  ;;  %685 = vrot.lane.b32.xlu0 %v662_v57, %s1659_s25  ;;  %v880_v27 = vmul.f32 %v1876_v34, %v2087_v17  ;;  %v811_v57 = vmul.f32 %v1888_v40, %v1955_v56  ;;  %v1026_v34 = vmul.f32 %v1892_v42, %v2087_v17 }
 0x121   : > { %v957_v40 = vmul.f32 %v1904_v50, %v1955_v56  ;;  %v663_v42 = vmul.f32 %v1872_v32, %v1966_v2  ;;  %v956_v32 = vmul.f32 %v1904_v50, %v1971_v5 }
 0x124   : > { %904 = vrot.lane.b32.xlu1 %v881_v35, %s1656_s22  ;;  %758 = vrot.lane.b32.xlu0 %v735_v16, %s1660_s26  ;;  %v738_v35 = vmul.f32 %v1880_v36, %v1955_v56  ;;  %v2139_v16 = vpop.permute.xlu0 %555 }
 0x128   : > { %969 = vrot.lane.b32.xlu1 %v950_v37, %s1662_s12  ;;  %831 = vrot.lane.b32.xlu0 %v808_v18, %s1661_s10  ;;  %v2150_v37 = vpop.permute.xlu0 %1166  ;;  %v2159_v18 = vpop.permute.xlu1 %1161 }
 0x12c   : > { %1050 = vrot.lane.b32.xlu1 %v1027_v21, %s1658_s24  ;;  %896 = vrot.lane.b32.xlu0 %v877_v47, %s1656_s22  ;;  %v2163_v21 = vpop.permute.xlu0 %1171 }
 0x130   : > { %1115 = vrot.lane.b32.xlu1 %v1096_v14, %s1663_s13  ;;  %977 = vrot.lane.b32.xlu0 %v954_v53, %s1662_s12  ;;  %v736_v14 = vmul.f32 %v1880_v36, %v1966_v2 }
 0x134   : > { %827 = vrot.lane.b32.xlu1 %v806_v39, %s1661_s10  ;;  %1042 = vrot.lane.b32.xlu0 %v1023_v55, %s1658_s24  ;;  %v882_v55 = vmul.f32 %v1896_v44, %v1966_v2 }
 0x138   : > { %973 = vrot.lane.b32.xlu1 %v952_v58, %s1662_s12  ;;  %1123 = vrot.lane.b32.xlu0 %v1100_v60, %s1663_s13  ;;  %v955_v58 = vmul.f32 %v1904_v50, %v1966_v2 }
 0x13c   : > { %1119 = vrot.lane.b32.xlu1 %v1098_v45, %s1663_s13  ;;  %608 = vrot.lane.b32.xlu0 %v587_v20, %s1657_s23  ;;  %v591_v45 = vmul.f32 %v1868_v30, %v1971_v5 }
 0x140   : > { %610 = vrot.lane.b32.xlu1 %v588_v52, %s1657_s23  ;;  %681 = vrot.lane.b32.xlu0 %v660_v61, %s1659_s25  ;;  %v737_v61 = vmul.f32 %v1880_v36, %v1971_v5 }
 0x144   : > { %683 = vrot.lane.b32.xlu1 %v661_v6, %s1659_s25  ;;  %754 = vrot.lane.b32.xlu0 %v733_v3, %s1660_s26  ;;  %v1103_v3 = vmul.f32 %v1911_v59, %v1955_v56 }
 0x148   : > { %756 = vrot.lane.b32.xlu1 %v734_v33, %s1660_s26  ;;  %900 = vrot.lane.b32.xlu0 %v879_v25, %s1656_s22  ;;  %v1102_v33 = vmul.f32 %v1911_v59, %v1971_v5 }
 0x14c   : > { %829 = vrot.lane.b32.xlu1 %v807_v28, %s1661_s10  ;;  %1046 = vrot.lane.b32.xlu0 %v1025_v26, %s1658_s24 }
 0x150   : > { %691 = vrot.lane.b32.xlu1 %v665_v29, %s1659_s25  ;;  %618 = vrot.lane.b32.xlu0 %v592_v12, %s1657_s23 }
 0x154   : > { %975 = vrot.lane.b32.xlu1 %v953_v31, %s1662_s12  ;;  %902 = vrot.lane.b32.xlu0 %v880_v27, %s1656_s22 }
 0x158   : > { %837 = vrot.lane.b32.xlu1 %v811_v57, %s1661_s10  ;;  %764 = vrot.lane.b32.xlu0 %v738_v35, %s1660_s26 }
 0x15c   : > { %1121 = vrot.lane.b32.xlu1 %v1099_v38, %s1663_s13  ;;  %1048 = vrot.lane.b32.xlu0 %v1026_v34, %s1658_s24  ;;  %v565_v34 = vmul.f32 %v1922_v13, %v1918_v4 }
 0x160   : > { %983 = vrot.lane.b32.xlu1 %v957_v40, %s1662_s12  ;;  %910 = vrot.lane.b32.xlu0 %v884_v15, %s1656_s22 }
 0x164   : > { %1056 = vrot.lane.b32.xlu1 %v1030_v46, %s1658_s24  ;;  %687 = vrot.lane.b32.xlu0 %v663_v42, %s1659_s25 }
 0x168   : > { %614 = vrot.lane.b32.xlu1 %v590_v19, %s1657_s23  ;;  %833 = vrot.lane.b32.xlu0 %v1997_v22, %s1661_s10 }
 0x16a   : > { %v2168_v47 = vpop.permute.xlu1 %898  ;;  %v2172_v53 = vpop.permute.xlu0 %606 }
 0x16b   : > { %v638_v46 = vadd.f32 %v2172_v53, %v565_v34 }
 0x16c   : > { %760 = vrot.lane.b32.xlu1 %v736_v14, %s1660_s26  ;;  %1052 = vrot.lane.b32.xlu0 %v1028_v54, %s1658_s24 }
 0x16e   : > { %v2178_v39 = vpop.permute.xlu1 %1044  ;;  %v2182_v22 = vpop.permute.xlu0 %679 }
 0x16f   : > { %v711_v54 = vadd.f32 %v2182_v22, %v638_v46 }
 0x170   : > { %906 = vrot.lane.b32.xlu1 %v882_v55, %s1656_s22  ;;  %689 = vrot.lane.b32.xlu0 %v664_v1, %s1659_s25 }
 0x172   : > { %v603_v43 = vpop.permute.xlu1 %602  ;;  %v753_v60 = vpop.permute.xlu0 %752 }
 0x173   : > { %v784_v4 = vadd.f32 %v753_v60, %v711_v54 }
 0x174   : > { %979 = vrot.lane.b32.xlu1 %v955_v58, %s1662_s12  ;;  %835 = vrot.lane.b32.xlu0 %v2004_v48, %s1661_s10  ;;  %v1029_v48 = vmul.f32 %v1902_v49, %v1971_v5  ;;  %v1193_v49 = vld [vmem:[%s2425_s7] sm:$0xf] }
 0x176   : > { %v676_v44 = vpop.permute.xlu1 %675  ;;  %v826_v20 = vpop.permute.xlu0 %825 }
 0x177   : > { %v857_v58 = vadd.f32 %v826_v20, %v784_v4 }
 0x178   : > { %616 = vrot.lane.b32.xlu1 %v591_v45, %s1657_s23  ;;  %981 = vrot.lane.b32.xlu0 %v956_v32, %s1662_s12 }
 0x179   : > { %v930_v32 = vadd.f32 %v2168_v47, %v857_v58 }
 0x17a   : > { %v749_v52 = vpop.permute.xlu1 %748  ;;  %v2201_v6 = vpop.permute.xlu0 %971 }
 0x17c   : > { %762 = vrot.lane.b32.xlu1 %v737_v61, %s1660_s26  ;;  %1054 = vrot.lane.b32.xlu0 %v1029_v48, %s1658_s24  ;;  %s1495_s24 = smul.u32 192, %s1732_s9  ;;  %s1665_s9 = smov [#allocation2]  }
 0x17d   : > { %s1585_s18 = sshll.u32 %s1665_s9, 4  ;;  %s1586_s18 = int_to_ptr.vmem [resolvable:$false] %s1585_s18 }
 0x17e   : > { %v2207_v30 = vpop.permute.xlu1 %894  ;;  %v2209_v50 = vpop.permute.xlu0 %1117  ;;  %s2376_s12 = scalar_lea.hbm %s2426_s8, %s1495_s24  ;;  %s1587_s19 = scalar_lea.vmem %s1586_s18, 384 }
 0x180   : > { %908 = vrot.lane.b32.xlu1 %v2009_v51, %s1656_s22  ;;  %1129 = vrot.lane.b32.xlu0 %v1103_v3, %s1663_s13  ;;  %v1101_v51 = vmul.f32 %v1911_v59, %v1966_v2  ;;  %s1493_s22 = smul.u32 12, %s296_s21 }
 0x182   : > { %v2216_v36 = vpop.permute.xlu1 %1040  ;;  %v822_v25 = vpop.permute.xlu0 %821  ;;  %s298_s23 = scalar_lea.vmem [#allocation2], %s1493_s22 }
 0x183   : > { %s1380_s25 = sshll.u32 %s298_s23, 4  ;;  %s2378_s25 = int_to_ptr.vmem [resolvable:$true] %s1380_s25 }
 0x184   : > { %1127 = vrot.lane.b32.xlu1 %v1102_v33, %s1663_s13  ;;  %1196 = vperm.xlu0 %1577, %v1193_v49   ;;  %s1581_s17 = scalar_lea.vmem %s2378_s25, 192  ;;  %p1588_p0 = scmp.lt.s32.totalorder %s2378_s25, %s1586_s18 }
 0x185   : > { %p1582_p11 = scmp.ne.s32.totalorder %s2378_s25, %s1581_s17  ;;  %p1589_p1 = scmp.lt.s32.totalorder %s1587_s19, %s1581_s17 }
 0x186   : > { %v605_v56 = vpop.permute.xlu1 %604  ;;  %v968_v28 = vpop.permute.xlu0 %967 }
 0x187   : > { %v621_v26 = vsel %vm620_vm3, %v603_v43, %v605_v56  ;;  %v622_v29 = vsel %vm620_vm3, %v605_v56, %v2172_v53  ;;  %p1583_p12 = pnand %p1582_p11, %p1749_p5  ;;  %p1590_p2 = por %p1589_p1, %p1588_p0 }
 0x188   : > { %v636_v12 = vadd.f32 %v621_v26, %v1942_v23  ;;  %v637_v31 = vadd.f32 %v622_v29, %v1947_v24  ;;  %1125 = vrot.lane.b32.xlu1 %v1101_v51, %s1663_s13  ;;  %1346 = vrot.lane.b32.xlu0 %v1794_v9, %s1661_s10  ;;  %s1366_s13 = scalar_lea.sflag [#allocation3], %s296_s21 }
 0x189   : > { %p1584_p13 = pneg %p1583_p12 }
 0x18a   : > { %v678_v5 = vpop.permute.xlu1 %677  ;;  %v2234_v27 = vpop.permute.xlu0 %1113 }
 0x18b   : > { %v694_v59 = vsel %vm693_vm4, %v676_v44, %v678_v5  ;;  %v695_v2 = vsel %vm693_vm4, %v678_v5, %v2182_v22  ;;  %p1591_p3 = pnand %p1590_p2, %p1584_p13 }
 0x18c   : > { %v709_v57 = vadd.f32 %v694_v59, %v636_v12  ;;  %v710_v35 = vadd.f32 %v695_v2, %v637_v31  ;;  %1344 = vrot.lane.b32.xlu1 %v1788_v8, %s1661_s10 }
 0x18e   : > { %v751_v23 = vpop.permute.xlu1 %750  ;;  %v2241_v24 = vpop.permute.xlu0 %612 }
 0x18f   : > { %v767_v38 = vsel %vm766_vm5, %v749_v52, %v751_v23  ;;  %v768_v9 = vsel %vm766_vm5, %v751_v23, %v753_v60 }
 0x190   : > { %v782_v40 = vadd.f32 %v767_v38, %v709_v57  ;;  %v783_v15 = vadd.f32 %v768_v9, %v710_v35  ;;  %1348 = vrot.lane.b32.xlu1 %v1786_v7, %s1661_s10  ;;  %v568_v7 = vmul.f32 %v2139_v16, %v2027_v63 }
 0x192   : > { %v824_v42 = vpop.permute.xlu1 %823  ;;  %v2250_v8 = vpop.permute.xlu0 %685  ;;  %v641_v53 = vadd.f32 %v2241_v24, %v568_v7 }
 0x193   : > { %v840_v19 = vsel %vm839_vm6, %v822_v25, %v824_v42  ;;  %v841_v14 = vsel %vm839_vm6, %v824_v42, %v826_v20  ;;  %v1003_v20 = vadd.f32 %v2201_v6, %v930_v32 }
 0x194   : > { %v855_v55 = vadd.f32 %v840_v19, %v782_v40  ;;  %v856_v1 = vadd.f32 %v841_v14, %v783_v15  ;;  %v714_v22 = vadd.f32 %v2250_v8, %v641_v53 }
 0x195   : > { %v1076_v31 = vadd.f32 %v2178_v39, %v1003_v20  ;;  %v567_v20 = vmul.f32 %v2139_v16, %v2087_v17 }
 0x196   : > { %v2255_v13 = vpop.permute.xlu1 %904  ;;  %v2257_v43 = vpop.permute.xlu0 %758 }
 0x197   : > { %v787_v60 = vadd.f32 %v2257_v43, %v714_v22 }
 0x19a   : > { %v970_v44 = vpop.permute.xlu1 %969  ;;  %v2262_v45 = vpop.permute.xlu0 %831 }
 0x19b   : > { %v860_v63 = vadd.f32 %v2262_v45, %v787_v60  ;;  %v986_v25 = vsel %vm985_vm8, %v968_v28, %v970_v44  ;;  %v987_v56 = vsel %vm985_vm8, %v970_v44, %v2201_v6  ;;  %v1149_v28 = vadd.f32 %v2209_v50, %v1076_v31 }
 0x19d   : > { %v933_v5 = vadd.f32 %v2255_v13, %v860_v63 }
 0x19e   : > { %v2267_v52 = vpop.permute.xlu1 %1050  ;;  %v897_v61 = vpop.permute.xlu0 %896 }
 0x19f   : > { %v913_v48 = vsel %vm912_vm7, %v2207_v30, %v897_v61  ;;  %v914_v3 = vsel %vm912_vm7, %v897_v61, %v2168_v47  ;;  %v566_v61 = vmul.f32 %v2139_v16, %v2065_v41 }
 0x1a0   : > { %v928_v49 = vadd.f32 %v913_v48, %v855_v55  ;;  %v929_v33 = vadd.f32 %v914_v3, %v856_v1 }
 0x1a2   : > { %v1116_v51 = vpop.permute.xlu1 %1115  ;;  %v2278_v26 = vpop.permute.xlu0 %977  ;;  %v1001_v29 = vadd.f32 %v986_v25, %v928_v49  ;;  %v1002_v12 = vadd.f32 %v987_v56, %v929_v33 }
 0x1a3   : > { %v1006_v30 = vadd.f32 %v2278_v26, %v933_v5  ;;  %v1132_v23 = vsel %vm1131_vm10, %v2234_v27, %v1116_v51  ;;  %v1133_v38 = vsel %vm1131_vm10, %v1116_v51, %v2209_v50 }
 0x1a5   : > { %v1079_v9 = vadd.f32 %v2267_v52, %v1006_v30 }
 0x1a6   : > { %v828_v47 = vpop.permute.xlu1 %827  ;;  %v1043_v59 = vpop.permute.xlu0 %1042 }
 0x1a7   : > { %v1059_v6 = vsel %vm1058_vm9, %v2216_v36, %v1043_v59  ;;  %v1060_v2 = vsel %vm1058_vm9, %v1043_v59, %v2178_v39  ;;  %v1176_v36 = vadd.f32 %v2159_v18, %v1149_v28 }
 0x1a8   : > { %v1074_v57 = vadd.f32 %v1059_v6, %v1001_v29  ;;  %v1075_v35 = vadd.f32 %v1060_v2, %v1002_v12 }
 0x1a9   : > { %v1185_v54 = vmax.f32 %v1176_v36, 0.0 }
 0x1aa   : > { %v974_v34 = vpop.permute.xlu1 %973  ;;  %v1147_v40 = vadd.f32 %v1132_v23, %v1074_v57  ;;  %v2293_v15 = vadd.f32 %v1133_v38, %v1075_v35  ;;  %v1124_v46 = vpop.permute.xlu0 %1123 }
 0x1ab   : > { %v1152_v42 = vadd.f32 %v1124_v46, %v1079_v9 }
 0x1ad   : > { %v1179_v39 = vadd.f32 %v2150_v37, %v1152_v42 }
 0x1ae   : > { %v1120_v19 = vpop.permute.xlu1 %1119  ;;  %v609_v14 = vpop.permute.xlu0 %608 }
 0x1af   : > { %v1188_v55 = vmax.f32 %v1179_v39, 0.0 }
 0x1b1   : > { %v1491_v27 = vpack.c.bf16 %v1188_v55, %v1185_v54 }
 0x1b2   : > { %v611_v1 = vpop.permute.xlu1 %610  ;;  %v682_v4 = vpop.permute.xlu0 %681 }
 0x1b3   : > { %1492 = vmatpush3.bf16.msra.mxu1 %v1491_v27  ;;  %v623_v22 = vsel %vm620_vm3, %v609_v14, %v611_v1  ;;  %v624_v60 = vsel %vm620_vm3, %v611_v1, %v2241_v24  ;;  %v1175_v1 = vadd.f32 %v2159_v18, %v2293_v15 }
 0x1b4   : > { %1481 = vmatprep.subr.mxu1 %v1645_v0  ;;  %v639_v3 = vadd.f32 %v623_v22, %v566_v61  ;;  %v640_v49 = vadd.f32 %v624_v60, %v567_v20 }
 0x1b6   : > { %v684_v50 = vpop.permute.xlu1 %683  ;;  %v755_v58 = vpop.permute.xlu0 %754 }
 0x1b7   : > { %v696_v63 = vsel %vm693_vm4, %v682_v4, %v684_v50  ;;  %v697_v0 = vsel %vm693_vm4, %v684_v50, %v2250_v8 }
 0x1b8   : > { %v712_v41 = vadd.f32 %v696_v63, %v639_v3  ;;  %v713_v56 = vadd.f32 %v697_v0, %v640_v49 }
 0x1ba   : > { %v757_v7 = vpop.permute.xlu1 %756  ;;  %v901_v53 = vpop.permute.xlu0 %900 }
 0x1bb   : > { %v769_v25 = vsel %vm766_vm5, %v755_v58, %v757_v7  ;;  %v770_v24 = vsel %vm766_vm5, %v757_v7, %v2257_v43 }
 0x1bc   : > { %v785_v8 = vadd.f32 %v769_v25, %v712_v41  ;;  %v786_v29 = vadd.f32 %v770_v24, %v713_v56 }
 0x1be   : > { %v830_v44 = vpop.permute.xlu1 %829  ;;  %v1047_v32 = vpop.permute.xlu0 %1046 }
 0x1bf   : > { %v842_v17 = vsel %vm839_vm6, %v828_v47, %v830_v44  ;;  %v843_v16 = vsel %vm839_vm6, %v830_v44, %v2262_v45  ;;  %v1184_v44 = vmax.f32 %v1175_v1, 0.0 }
 0x1c0   : > { %v858_v30 = vadd.f32 %v842_v17, %v785_v8  ;;  %v859_v59 = vadd.f32 %v843_v16, %v786_v29 }
 0x1c2   : > { %v2308_v48 = vpop.permute.xlu1 %691  ;;  %v2310_v33 = vpop.permute.xlu0 %618 }
 0x1c3   : > { %v644_v60 = vadd.f32 %v2310_v33, %v1961_v62 }
 0x1c5   : > { %v717_v61 = vadd.f32 %v2308_v48, %v644_v60 }
 0x1c6   : > { %v976_v51 = vpop.permute.xlu1 %975  ;;  %v903_v12 = vpop.permute.xlu0 %902 }
 0x1c7   : > { %v915_v31 = vsel %vm912_vm7, %v901_v53, %v903_v12  ;;  %v916_v5 = vsel %vm912_vm7, %v903_v12, %v2255_v13  ;;  %v988_v47 = vsel %vm985_vm8, %v974_v34, %v976_v51  ;;  %v989_v45 = vsel %vm985_vm8, %v976_v51, %v2278_v26 }
 0x1c8   : > { %v931_v43 = vadd.f32 %v915_v31, %v858_v30  ;;  %v932_v6 = vadd.f32 %v916_v5, %v859_v59  ;;  %v1174_v34 = vadd.f32 %v2159_v18, %v1147_v40 }
 0x1ca   : > { %v2321_v28 = vpop.permute.xlu1 %837  ;;  %v765_v2 = vpop.permute.xlu0 %764  ;;  %v1004_v35 = vadd.f32 %v988_v47, %v931_v43  ;;  %v1005_v23 = vadd.f32 %v989_v45, %v932_v6  ;;  %v1183_v58 = vmax.f32 %v1174_v34, 0.0 }
 0x1cb   : > { %v790_v63 = vadd.f32 %v765_v2, %v717_v61 }
 0x1cd   : > { %v863_v49 = vadd.f32 %v2321_v28, %v790_v63 }
 0x1ce   : > { %v1122_v57 = vpop.permute.xlu1 %1121  ;;  %v1049_v38 = vpop.permute.xlu0 %1048 }
 0x1cf   : > { %v1061_v9 = vsel %vm1058_vm9, %v1047_v32, %v1049_v38  ;;  %v1062_v13 = vsel %vm1058_vm9, %v1049_v38, %v2267_v52  ;;  %v1134_v39 = vsel %vm1131_vm10, %v1120_v19, %v1122_v57  ;;  %v1135_v14 = vsel %vm1131_vm10, %v1122_v57, %v1124_v46 }
 0x1d0   : > { %v1077_v36 = vadd.f32 %v1061_v9, %v1004_v35  ;;  %v1078_v42 = vadd.f32 %v1062_v13, %v1005_v23 }
 0x1d2   : > { %v984_v54 = vpop.permute.xlu1 %983  ;;  %v1150_v55 = vadd.f32 %v1134_v39, %v1077_v36  ;;  %v1151_v26 = vadd.f32 %v1135_v14, %v1078_v42  ;;  %v911_v27 = vpop.permute.xlu0 %910 }
 0x1d3   : > { %v936_v25 = vadd.f32 %v911_v27, %v863_v49 }
 0x1d4   : > { %v1177_v4 = vadd.f32 %v2150_v37, %v1150_v55  ;;  %v1178_v50 = vadd.f32 %v2150_v37, %v1151_v26 }
 0x1d5   : > { %v1009_v29 = vadd.f32 %v984_v54, %v936_v25 }
 0x1d6   : > { %v1057_v52 = vpop.permute.xlu1 %1056  ;;  %v1186_v7 = vmax.f32 %v1177_v4, 0.0  ;;  %v1187_v53 = vmax.f32 %v1178_v50, 0.0  ;;  %v688_v19 = vpop.permute.xlu0 %687 }
 0x1d7   : > { %v1082_v47 = vadd.f32 %v1057_v52, %v1009_v29 }
 0x1d8   : > { %v1488_v46 = vpack.c.bf16 %v1186_v7, %v1183_v58  ;;  %v1486_v32 = vpack.c.bf16 %v1187_v53, %v1184_v44 }
 0x1da   : > { %v615_v22 = vpop.permute.xlu1 %614  ;;  %v834_v40 = vpop.permute.xlu0 %833  ;;  %1487 = vmatprep.subr.bf16.mxu0 %v1486_v32 }
 0x1db   : > { %1489 = vmatpush1.bf16.msra.mxu0 %v1488_v46 }
 0x1de   : > { %v761_v18 = vpop.permute.xlu1 %760  ;;  %v1053_v15 = vpop.permute.xlu0 %1052 }
 0x1e2   : > { %v907_v37 = vpop.permute.xlu1 %906  ;;  %v690_v20 = vpop.permute.xlu0 %689 }
 0x1e3   : > { %v698_v51 = vsel %vm693_vm4, %v688_v19, %v690_v20  ;;  %v699_v8 = vsel %vm693_vm4, %v690_v20, %v2308_v48 }
 0x1e6   : > { %v980_v0 = vpop.permute.xlu1 %979  ;;  %v836_v3 = vpop.permute.xlu0 %835 }
 0x1ea   : > { %v617_v24 = vpop.permute.xlu1 %616  ;;  %v982_v41 = vpop.permute.xlu0 %981 }
 0x1eb   : > { %v625_v56 = vsel %vm620_vm3, %v615_v22, %v617_v24  ;;  %v626_v17 = vsel %vm620_vm3, %v617_v24, %v2310_v33  ;;  %v991_v42 = vsel %vm985_vm8, %v982_v41, %v984_v54 }
 0x1ec   : > { %v642_v62 = vadd.f32 %v625_v56, %v1975_v10  ;;  %v643_v16 = vadd.f32 %v626_v17, %v1979_v11  ;;  %v844_v10 = vsel %vm839_vm6, %v834_v40, %v836_v3  ;;  %v845_v11 = vsel %vm839_vm6, %v836_v3, %v2321_v28 }
 0x1ee   : > { %v715_v12 = vadd.f32 %v698_v51, %v642_v62  ;;  %v716_v31 = vadd.f32 %v699_v8, %v643_v16  ;;  %v763_v5 = vpop.permute.xlu1 %762  ;;  %v1055_v30 = vpop.permute.xlu0 %1054 }
 0x1ef   : > { %v771_v59 = vsel %vm766_vm5, %v761_v18, %v763_v5  ;;  %v772_v43 = vsel %vm766_vm5, %v763_v5, %v765_v2  ;;  %v990_v2 = vsel %vm985_vm8, %v980_v0, %v982_v41  ;;  %v1064_v55 = vsel %vm1058_vm9, %v1055_v30, %v1057_v52 }
 0x1f0   : > { %v788_v6 = vadd.f32 %v771_v59, %v715_v12  ;;  %v789_v33 = vadd.f32 %v772_v43, %v716_v31  ;;  %v1063_v4 = vsel %vm1058_vm9, %v1053_v15, %v1055_v30 }
 0x1f2   : > { %v861_v45 = vadd.f32 %v844_v10, %v788_v6  ;;  %v862_v57 = vadd.f32 %v845_v11, %v789_v33  ;;  %v909_v48 = vpop.permute.xlu1 %908  ;;  %v1130_v35 = vpop.permute.xlu0 %1129 }
 0x1f3   : > { %v917_v23 = vsel %vm912_vm7, %v907_v37, %v909_v48  ;;  %v918_v38 = vsel %vm912_vm7, %v909_v48, %v911_v27  ;;  %v1155_v9 = vadd.f32 %v1130_v35, %v1082_v47  ;;  %v1192_v27 = vld [vmem:[%s2424_s6] sm:$0xf] }
 0x1f4   : > { %v934_v13 = vadd.f32 %v917_v23, %v861_v45  ;;  %v935_v36 = vadd.f32 %v918_v38, %v862_v57 }
 0x1f5   : > { %v1182_v39 = vadd.f32 %v2163_v21, %v1155_v9 }
 0x1f6   : > { %v1007_v14 = vadd.f32 %v990_v2, %v934_v13  ;;  %v1008_v28 = vadd.f32 %v991_v42, %v935_v36  ;;  %v1128_v34 = vpop.permute.xlu1 %1127 }
 0x1f7   : > { %v1191_v26 = vmax.f32 %v1182_v39, 0.0  ;;  %v1137_v50 = vsel %vm1131_vm10, %v1128_v34, %v1130_v35 }
 0x1f8   : > { %v1081_v1 = vadd.f32 %v1064_v55, %v1008_v28  ;;  %v1080_v58 = vadd.f32 %v1063_v4, %v1007_v14 }
 0x1f9   : > { %1482 = vmatpush3.msra.mxu1 %v1191_v26 }
 0x1fa   : > { %v1154_v54 = vadd.f32 %v1137_v50, %v1081_v1  ;;  %v1126_v7 = vpop.permute.xlu1 %1125  ;;  %1484 = vmatmul.mubr.msk.f32.vlgmr.msra.gmra.mrb[6].mxu1 %vm1199_vm11, %v1192_v27 }
 0x1fb   : > { %v1136_v52 = vsel %vm1131_vm10, %v1126_v7, %v1128_v34 }
 0x1fc   : > { %v1153_v53 = vadd.f32 %v1136_v52, %v1080_v58  ;;  %v1181_v19 = vadd.f32 %v2163_v21, %v1154_v54 }
 0x1fe   : > { %v1180_v44 = vadd.f32 %v2163_v21, %v1153_v53  ;;  %v1190_v46 = vmax.f32 %v1181_v19, 0.0  ;;  %v1345_v22 = vpop.permute.xlu1 %1344 }
 0x200   : > { %v1189_v32 = vmax.f32 %v1180_v44, 0.0  ;;  %1207 = vmatprep.subr.mxu0 %v1190_v46 }
 0x202   : > { %1208 = vmatpush1.msra.mxu0 %v1189_v32  ;;  %v1349_v18 = vpop.permute.xlu1 %1348 }
 0x203   : > { %1453 = vmatmul.mubr.msk.f32.vlgmr.msra.gmra.mrb[6].mxu0 %vm1199_vm11, %v1192_v27  ;;  %v1197_v40 = vpop.permute.xlu0 %1196 }
 0x207   : > { %v1347_v21 = vpop.permute.xlu0 %1346 }
 0x208   : > { %v1351_v0 = vsel %vm839_vm6, %v1347_v21, %v1349_v18  ;;  %v1350_v49 = vsel %vm839_vm6, %v1345_v22, %v1347_v21 }
 0x2cd   : > { %v1340_v60 = vpop.f32.mrb[6].mxu1 }
 0x2ce   : > { %v1341_v15 = vadd.f32 %v1340_v60, %v1197_v40  ;;  %v1485_v61 = vpop.f32.mrb[7].mxu1 }
 0x2d0   : > { %v1357_v37 = vadd.f32 %v1349_v18, %v1341_v15 }
 0x2d2   : > { %1364 = vst.msk [vmem:[%s298_s23 + $0x8] sm:$0xf] %vm1363_vm12, %v1357_v37 }
 0x2d6   : > { %v1269_v20 = vpop.f32.mrb[6].mxu0 }
 0x2d7   : > { %v1270_v63 = vadd.f32 %v1269_v20, %v1197_v40  ;;  %v1271_v3 = vpop.f32.mrb[7].mxu0 }
 0x2d8   : > { %v1272_v25 = vadd.f32 %v1271_v3, %v1197_v40 }
 0x2d9   : > { %v1355_v24 = vadd.f32 %v1350_v49, %v1270_v63 }
 0x2da   : > { %v1356_v41 = vadd.f32 %v1351_v0, %v1272_v25 }
 0x2dc   : > { %v1360_v56 = vcombine.low %v1355_v24, %v1356_v41 }
 0x2de   : > { %1362 = vst [vmem:[%s298_s23] sm:$0xff] %v1360_v56 }
 0x2df   : > { %1594 = shalt.err (!%p1591_p3)
}
 0x2e0   : > { %s1595_s20 = scalar_lea.hbm %s2376_s12, 192  ;;  %s1599_s23 = scalar_lea.hbm %s2426_s8, 384 }
 0x2e1   : > { %p1596_p4 = scmp.ne.s32.totalorder %s2376_s12, %s1595_s20  ;;  %p1600_p9 = scmp.lt.u32.totalorder %s2376_s12, %s2426_s8 }
 0x2e2   : > { %p1601_p10 = scmp.lt.u32.totalorder %s1599_s23, %s1595_s20  ;;  %p1603_p12 = scmp.lt.u32.totalorder %s1595_s20, %s2376_s12 }
 0x2e3   : > { %p1597_p7 = pnand %p1596_p4, %p1749_p5 }
 0x2e4   : > { %p1602_p11 = por %p1601_p10, %p1600_p9 }
 0x2e5   : > { %p1598_p8 = pneg %p1597_p7 }
 0x2e6   : > { %p1604_p13 = por %p1603_p12, %p1602_p11 }
 0x2e8   : > { %p1605_p0 = pnand %p1604_p13, %p1598_p8 }
 0x2ea   : > { %1608 = shalt.err (!%p1605_p0)
}
 0x2eb   : > { %1496 = dma.vmem_to_hbm [thread:$0]  (%p1749_p5), %s2378_s25, 192, %s2376_s12, %s1366_s13  }
 0x2ec PF: > { %p1502_p1 = scmp.ge.s32.totalorder %s1643_s30, 2  ;;  %s1392_s10 = sand.u32 1, %s1631_s27  }
 0x2ed   : > { %s1393_s17 = scalar_lea.sflag [#allocation3], %s1392_s10 }
 0x2ee   : > { %p1499_p2 = pnand %p1502_p1, %p1753_p6 }
 0x2f0   : > { %1626 = dma.done.wait (!%p1499_p2), %s1393_s17, 192  }
 0x2f1   : > { %1628 = vsyncadd (!%p1499_p2), %s1393_s17, 4294967104  ;;  %p18_p3 = scmp.ge.s32.totalorder %s1736_s11, 4   ;;  %s2429_s27 = smov %s1635_s28 }
 0x2f2   : > { %s2430_s28 = smov %s1639_s29  ;;  %s2431_s29 = smov %s1747_s14 }
 0x2f3   : > { %s2432_s30 = smov %s1736_s11  ;;  %20 = sbr.rel (!%p18_p3) target bundleno = 3 (0x3), region = 87 }
 0x2fa   :  { %1398 = vsyncpa [#allocation3], 1 }
 0x2fb   :  { %1400 = vsyncpa [#allocation3 + $0x1], 1 }

</bundles_post_ra>
